<compile_context>
chip_gen: v7x
topology: tpu7x:2x2x1
jax: 0.10.0
libtpu: 0.0.40
codegen_flags: <defaults>
</compile_context>

<pallas_src>
import functools
import math

import jax
import jax.numpy as jnp
from jax import lax
from jax.experimental import pallas as pl
from jax.experimental.pallas import tpu as pltpu


def _pim_msa_kernel(x_ref, wqkv_ref, w1_ref, w2_ref, o_ref, *,
                    scale, d_model, pack, seq_len):
    P, L, D = pack, seq_len, d_model

    # ---- fused QKV projection: one MXU push for all PACK problems ----------
    x2d = x_ref[...].reshape(P * L, D)                         # bf16 (P*L, D)
    qkv = jnp.dot(x2d, wqkv_ref[...],
                  preferred_element_type=jnp.float32)          # f32 (P*L, 3D)

    # static lane slices inside the kernel (no wrapper-side split)
    q = qkv[:, :D].reshape(P, L, D)
    k = qkv[:, D:2 * D].reshape(P, L, D)
    v = qkv[:, 2 * D:].reshape(P, L, D)

    # ---- scaled dot-product attention (f32, per-problem batch dim) ---------
    # contract last dims directly; no explicit transpose of k
    s = lax.dot_general(q, k, (((2,), (2,)), ((0,), (0,))),
                        preferred_element_type=jnp.float32) * scale  # (P,L,L)
    m = jnp.max(s, axis=-1, keepdims=True)
    e = jnp.exp(s - m)
    denom = jnp.sum(e, axis=-1, keepdims=True)
    p = e * pl.reciprocal(denom, approx=True)                  # EUP reciprocal

    attn = lax.dot_general(p, v, (((2,), (1,)), ((0,), (0,))),
                           preferred_element_type=jnp.float32)       # (P,L,D)

    # ---- feed-forward: (P*L,D) @ (D,4D) -> ReLU -> (P*L,4D) @ (4D,D) -------
    attn2d = attn.reshape(P * L, D).astype(jnp.bfloat16)
    h = jnp.dot(attn2d, w1_ref[...], preferred_element_type=jnp.float32)
    h = jnp.maximum(h, 0.0)                                    # ReLU in f32
    out = jnp.dot(h.astype(jnp.bfloat16), w2_ref[...],
                  preferred_element_type=jnp.float32)

    o_ref[...] = out.reshape(P, L, D).astype(o_ref.dtype)


def pim_msa_batched(xs, qkv_weight, ffnw_1, ffnw_2, *, pack=4):
    """Run N stacked (L, D) problems through one pallas_call.

    xs: (N, L, D). Returns (N, L, D) float32.
    """
    N, L, D = xs.shape
    assert qkv_weight.shape == (D, 3 * D)
    assert ffnw_1.shape == (D, 4 * D)
    assert ffnw_2.shape == (4 * D, D)

    # pad N up to a multiple of `pack` (zero rows are harmless: output is 0)
    n_pad = (-N) % pack
    if n_pad:
        xs = jnp.concatenate(
            [xs, jnp.zeros((n_pad, L, D), xs.dtype)], axis=0)
    n_total = xs.shape[0]
    grid = (n_total // pack,)

    # bf16 operands for MXU / halved input DMA; f32 accumulation in-kernel
    xs_b = xs.astype(jnp.bfloat16)
    wqkv_b = qkv_weight.astype(jnp.bfloat16)
    w1_b = ffnw_1.astype(jnp.bfloat16)
    w2_b = ffnw_2.astype(jnp.bfloat16)

    kernel = functools.partial(
        _pim_msa_kernel,
        scale=1.0 / math.sqrt(D), d_model=D, pack=pack, seq_len=L)

    out = pl.pallas_call(
        kernel,
        out_shape=jax.ShapeDtypeStruct((n_total, L, D), jnp.float32),
        grid=grid,
        in_specs=[
            pl.BlockSpec((pack, L, D), lambda g: (g, 0, 0)),   # per-step x
            pl.BlockSpec((D, 3 * D), lambda g: (0, 0)),        # weights stay
            pl.BlockSpec((D, 4 * D), lambda g: (0, 0)),        # resident in
            pl.BlockSpec((4 * D, D), lambda g: (0, 0)),        # VMEM
        ],
        out_specs=pl.BlockSpec((pack, L, D), lambda g: (g, 0, 0)),
        compiler_params=pltpu.CompilerParams(
            dimension_semantics=("parallel",)),                # v7x: 2 TCs
    )(xs_b, wqkv_b, w1_b, w2_b)

    return out[:N]


def pim_multiheaded_attention(query, qkv_weight, ffnw_1, ffnw_2):
    """JAX/Pallas equivalent of PIMMultiHeadedAttention.forward(query, ...)."""
    x = query
    if x.ndim == 3:
        x = x[0]            # squeeze ONLY the leading batch dim (batch == 1)
    return pim_msa_batched(x[None], qkv_weight, ffnw_1, ffnw_2)[0]


def _reference(x, qkv_weight, ffnw_1, ffnw_2):
    """Pure-JAX reference mirroring the kernel's bf16-operand / f32-acc math."""
    D = x.shape[-1]
    xb = x.astype(jnp.bfloat16)
    wqkv = qkv_weight.astype(jnp.bfloat16)
    w1 = ffnw_1.astype(jnp.bfloat16)
    w2 = ffnw_2.astype(jnp.bfloat16)
    qkv = jnp.dot(xb, wqkv, preferred_element_type=jnp.float32)
    q, k, v = qkv[:, :D], qkv[:, D:2 * D], qkv[:, 2 * D:]
    s = (q @ k.T) / math.sqrt(D)
    p = jax.nn.softmax(s, axis=-1)
    attn = p @ v
    h = jnp.maximum(
        jnp.dot(attn.astype(jnp.bfloat16), w1,
                preferred_element_type=jnp.float32), 0.0)
    return jnp.dot(h.astype(jnp.bfloat16), w2,
                   preferred_element_type=jnp.float32)


if __name__ == "__main__":
    h_heads = 4      # asserted in __init__, never used by pim_msa
    d_model = 32
    seq_len = 8
    batch = 1        # squeezed away in forward
    # NOTE: self.output_linear and dropout exist in __init__ but are never
    # used in forward, so they are intentionally omitted.

    key = jax.random.PRNGKey(0)
    k_q, k_qkv, k_f1, k_f2, k_stack = jax.random.split(key, 5)

    # Deterministic parameter init mirroring torch.rand (uniform [0, 1)).
    query = jax.random.uniform(k_q, (batch, seq_len, d_model), jnp.float32)
    qkv_weight = jax.random.uniform(k_qkv, (d_model, d_model * 3), jnp.float32)
    ffnw_1 = jax.random.uniform(k_f1, (d_model, d_model * 4), jnp.float32)
    ffnw_2 = jax.random.uniform(k_f2, (d_model * 4, d_model), jnp.float32)

    # ---- module-equivalent single-problem path -----------------------------
    out = jax.block_until_ready(
        pim_multiheaded_attention(query, qkv_weight, ffnw_1, ffnw_2))
    ref = _reference(query[0], qkv_weight, ffnw_1, ffnw_2)
    assert out.shape == (seq_len, d_model)
    assert jnp.allclose(out, ref, rtol=2e-2, atol=2e-1), "single-problem mismatch"

    # ---- batched path: 8 problems through one grid (amortized launch) ------
    xs = jax.random.uniform(k_stack, (8, seq_len, d_model), jnp.float32)
    out_b = jax.block_until_ready(
        pim_msa_batched(xs, qkv_weight, ffnw_1, ffnw_2))
    ref_b = jnp.stack(
        [_reference(xs[i], qkv_weight, ffnw_1, ffnw_2) for i in range(8)])
    assert out_b.shape == (8, seq_len, d_model)
    assert jnp.allclose(out_b, ref_b, rtol=2e-2, atol=2e-1), "batched mismatch"

    print("KERNEL_OK")
</pallas_src>

<mosaic_0001>
module attributes {stable_mosaic.version = 11 : i64} {
  func.func @_pim_msa_kernel(%arg0: i32, %arg1: memref<4x8x32xbf16, #tpu.memory_space<vmem>>, %arg2: memref<32x96xbf16, #tpu.memory_space<vmem>>, %arg3: memref<32x128xbf16, #tpu.memory_space<vmem>>, %arg4: memref<128x32xbf16, #tpu.memory_space<vmem>>, %arg5: memref<4x8x32xf32, #tpu.memory_space<vmem>>) attributes {dimension_semantics = [#tpu.dimension_semantics<parallel>], iteration_bounds = array<i64: 1>, scalar_prefetch = 0 : i64, scratch_operands = 0 : i64, tpu.core_type = #tpu.core_type<tc>, window_params = [{transform_indices = @transform_0, window_bounds = array<i64: 4, 8, 32>}, {pipeline_mode = #tpu.pipeline_mode<synchronous>, transform_indices = @transform_1, window_bounds = array<i64: 32, 96>}, {pipeline_mode = #tpu.pipeline_mode<synchronous>, transform_indices = @transform_2, window_bounds = array<i64: 32, 128>}, {pipeline_mode = #tpu.pipeline_mode<synchronous>, transform_indices = @transform_3, window_bounds = array<i64: 128, 32>}, {transform_indices = @transform_4, window_bounds = array<i64: 4, 8, 32>}]} {
    %c0 = arith.constant 0 : index
    %c0_0 = arith.constant 0 : index
    %c0_1 = arith.constant 0 : index
    %0 = vector.load %arg1[%c0, %c0_0, %c0_1] : memref<4x8x32xbf16, #tpu.memory_space<vmem>>, vector<4x8x32xbf16>
    %1 = vector.shape_cast %0 : vector<4x8x32xbf16> to vector<32x32xbf16>
    %c0_2 = arith.constant 0 : index
    %c0_3 = arith.constant 0 : index
    %2 = vector.load %arg2[%c0_2, %c0_3] : memref<32x96xbf16, #tpu.memory_space<vmem>>, vector<32x96xbf16>
    %cst = arith.constant dense<0.000000e+00> : vector<32x96xf32>
    %3 = tpu.matmul %1, %2, %cst {dimension_numbers = #tpu.dot_dimension_numbers<[1], [0], [0], [1], [0, 0, 1, 1], [], []>} : vector<32x32xbf16>, vector<32x96xbf16>, vector<32x96xf32> -> vector<32x96xf32>
    %4 = vector.extract_strided_slice %3 {offsets = [0, 0], sizes = [32, 32], strides = [1, 1]} : vector<32x96xf32> to vector<32x32xf32>
    %5 = vector.shape_cast %4 : vector<32x32xf32> to vector<4x8x32xf32>
    %6 = vector.extract_strided_slice %3 {offsets = [0, 32], sizes = [32, 32], strides = [1, 1]} : vector<32x96xf32> to vector<32x32xf32>
    %7 = vector.shape_cast %6 : vector<32x32xf32> to vector<4x8x32xf32>
    %8 = vector.extract_strided_slice %3 {offsets = [0, 64], sizes = [32, 32], strides = [1, 1]} : vector<32x96xf32> to vector<32x32xf32>
    %9 = vector.shape_cast %8 : vector<32x32xf32> to vector<4x8x32xf32>
    %cst_4 = arith.constant dense<0.000000e+00> : vector<4x8x8xf32>
    %10 = tpu.matmul %5, %7, %cst_4 {dimension_numbers = #tpu.dot_dimension_numbers<[2], [2], [1], [1], [0, 0, 0, 1, 1, 1], [0], [0]>} : vector<4x8x32xf32>, vector<4x8x32xf32>, vector<4x8x8xf32> -> vector<4x8x8xf32>
    %cst_5 = arith.constant 0.176776692 : f32
    %11 = vector.broadcast %cst_5 : f32 to vector<4x8x8xf32>
    %12 = arith.mulf %10, %11 : vector<4x8x8xf32>
    %cst_6 = arith.constant dense<0xFF800000> : vector<4x8xf32>
    %13 = vector.multi_reduction <maximumf>, %12, %cst_6 [2] : vector<4x8x8xf32> to vector<4x8xf32>
    %14 = vector.shape_cast %13 : vector<4x8xf32> to vector<4x8x1xf32>
    %15 = vector.broadcast %14 : vector<4x8x1xf32> to vector<4x8x8xf32>
    %16 = arith.subf %12, %15 : vector<4x8x8xf32>
    %17 = math.exp %16 : vector<4x8x8xf32>
    %cst_7 = arith.constant dense<0.000000e+00> : vector<4x8xf32>
    %18 = vector.multi_reduction <add>, %17, %cst_7 [2] : vector<4x8x8xf32> to vector<4x8xf32>
    %19 = vector.shape_cast %18 : vector<4x8xf32> to vector<4x8x1xf32>
    %20 = tpu.reciprocal %19 {approx = true} : vector<4x8x1xf32> -> vector<4x8x1xf32>
    %21 = vector.broadcast %20 : vector<4x8x1xf32> to vector<4x8x8xf32>
    %22 = arith.mulf %17, %21 : vector<4x8x8xf32>
    %cst_8 = arith.constant dense<0.000000e+00> : vector<4x8x32xf32>
    %23 = tpu.matmul %22, %9, %cst_8 {dimension_numbers = #tpu.dot_dimension_numbers<[2], [1], [1], [2], [0, 0, 0, 1, 1, 2], [0], [0]>} : vector<4x8x8xf32>, vector<4x8x32xf32>, vector<4x8x32xf32> -> vector<4x8x32xf32>
    %24 = vector.shape_cast %23 : vector<4x8x32xf32> to vector<32x32xf32>
    %25 = arith.truncf %24 : vector<32x32xf32> to vector<32x32xbf16>
    %c0_9 = arith.constant 0 : index
    %c0_10 = arith.constant 0 : index
    %26 = vector.load %arg3[%c0_9, %c0_10] : memref<32x128xbf16, #tpu.memory_space<vmem>>, vector<32x128xbf16>
    %cst_11 = arith.constant dense<0.000000e+00> : vector<32x128xf32>
    %27 = tpu.matmul %25, %26, %cst_11 {dimension_numbers = #tpu.dot_dimension_numbers<[1], [0], [0], [1], [0, 0, 1, 1], [], []>} : vector<32x32xbf16>, vector<32x128xbf16>, vector<32x128xf32> -> vector<32x128xf32>
    %cst_12 = arith.constant 0.000000e+00 : f32
    %28 = vector.broadcast %cst_12 : f32 to vector<32x128xf32>
    %29 = arith.maximumf %27, %28 : vector<32x128xf32>
    %30 = arith.truncf %29 : vector<32x128xf32> to vector<32x128xbf16>
    %c0_13 = arith.constant 0 : index
    %c0_14 = arith.constant 0 : index
    %31 = vector.load %arg4[%c0_13, %c0_14] : memref<128x32xbf16, #tpu.memory_space<vmem>>, vector<128x32xbf16>
    %cst_15 = arith.constant dense<0.000000e+00> : vector<32x32xf32>
    %32 = tpu.matmul %30, %31, %cst_15 {dimension_numbers = #tpu.dot_dimension_numbers<[1], [0], [0], [1], [0, 0, 1, 1], [], []>} : vector<32x128xbf16>, vector<128x32xbf16>, vector<32x32xf32> -> vector<32x32xf32>
    %33 = vector.shape_cast %32 : vector<32x32xf32> to vector<4x8x32xf32>
    %c0_16 = arith.constant 0 : index
    %c0_17 = arith.constant 0 : index
    %c0_18 = arith.constant 0 : index
    %34 = vector.load %arg5[%c0_16, %c0_17, %c0_18] : memref<4x8x32xf32, #tpu.memory_space<vmem>>, vector<4x8x32xf32>
    tpu.vector_store %arg5[%c0_16, %c0_17, %c0_18], %33 {strides = array<i32>} : memref<4x8x32xf32, #tpu.memory_space<vmem>>, vector<4x8x32xf32>,
    return
  }
  func.func @transform_0(%arg0: i32) -> (i32, i32, i32) {
    %c0_i32 = arith.constant 0 : i32
    %c0_i32_0 = arith.constant 0 : i32
    %c0_i32_1 = arith.constant 0 : i32
    return %arg0, %c0_i32, %c0_i32_0 : i32, i32, i32
  }
  func.func @transform_1(%arg0: i32) -> (i32, i32) {
    %c0_i32 = arith.constant 0 : i32
    %c0_i32_0 = arith.constant 0 : i32
    %c0_i32_1 = arith.constant 0 : i32
    return %c0_i32, %c0_i32_0 : i32, i32
  }
  func.func @transform_2(%arg0: i32) -> (i32, i32) {
    %c0_i32 = arith.constant 0 : i32
    %c0_i32_0 = arith.constant 0 : i32
    %c0_i32_1 = arith.constant 0 : i32
    return %c0_i32, %c0_i32_0 : i32, i32
  }
  func.func @transform_3(%arg0: i32) -> (i32, i32) {
    %c0_i32 = arith.constant 0 : i32
    %c0_i32_0 = arith.constant 0 : i32
    %c0_i32_1 = arith.constant 0 : i32
    return %c0_i32, %c0_i32_0 : i32, i32
  }
  func.func @transform_4(%arg0: i32) -> (i32, i32, i32) {
    %c0_i32 = arith.constant 0 : i32
    %c0_i32_0 = arith.constant 0 : i32
    %c0_i32_1 = arith.constant 0 : i32
    return %arg0, %c0_i32, %c0_i32_0 : i32, i32, i32
  }
}

</mosaic_0001>

<bundles_post_ra>
// kernel: tpu_custom_call.1
= control target key start
LH: loop header
LB: loop body
LE: loop exit
PB: predicated region body
PF: predicated region fallthrough
CT: control target
= control target key end

     0   :  { %vm49_vm0 = vcmask 261120   ;;  %s1336_s0 = inlined_call_operand.vmem [shape: bf16[4,8,32], index: 0, kind: input, shape index: {}]   ;;  %s1337_s1 = inlined_call_operand.vmem [shape: bf16[32,96], index: 1, kind: input, shape index: {}]   ;;  %s1338_s2 = inlined_call_operand.vmem [shape: bf16[32,128], index: 2, kind: input, shape index: {}]   ;;  %s1339_s3 = inlined_call_operand.vmem [shape: bf16[128,32], index: 3, kind: input, shape index: {}]   ;;  %s1340_s4 = inlined_call_operand.hbm [shape: f32[4,8,32], index: 4, kind: output, shape index: {}]  }
   0x1   :  { %v1125_v0 = vld [vmem:[%s1337_s1] sm:$0xff]   ;;  %v1126_v1 = vld [vmem:[%s1337_s1 + $0x8] sm:$0xff]  }
   0x2   :  { %1042 = vmatprep.subr.bf16.mxu1 %v1125_v0  ;;  %v1127_v2 = vld [vmem:[%s1336_s0] sm:$0xff]   ;;  %v1128_v3 = vld [vmem:[%s1336_s0 + $0x8] sm:$0xff]  }
   0x3   :  { %1043 = vmatpush3.bf16.msra.mxu1 %v1125_v0  ;;  %1046 = vmatprep.mubr.msk.bf16.mxu1 %vm49_vm0, %v1127_v2 }
   0x4   :  { %1044 = vmatprep.subr.bf16.mxu1 %v1126_v1 }
   0x7   :  { %1045 = vmatpush3.bf16.msra.mxu1 %v1126_v1 }
   0xa   :  { %1047 = vmatmul.mubr.msk.bf16.vlgmr.msra.gmra.mrb[0].mxu1 %vm49_vm0, %v1128_v3 }
   0xb   :  { %9 = vsyncpa [#allocation3], 0  ;;  %v1179_v4 = vmov 0.0   ;;  %vm1180_vm1 = vmmov 0   ;;  %s1181_s1 = smov 96   ;;  %vm417_vm2 = vcmask 64512  }
   0xc   :  { %1050 = vmatprep.subr.mxu1 %v1179_v4  ;;  %1065 = vmatprep.subr.mxu0 %v1179_v4  ;;  %s1182_s0 = smov 64   ;;  %v1129_v1 = vld [vmem:[%s1338_s2] sm:$0xff]   ;;  %v1130_v2 = vld [vmem:[%s1338_s2 + $0x8] sm:$0xff]   ;;  %s1183_s16 = smov [#allocation2]  }
   0xd   :  { %1052 = vmatprep.mubr.msk.f32.mxu1 %vm1180_vm1, %v1179_v4  ;;  %1067 = vmatprep.mubr.msk.f32.mxu0 %vm1180_vm1, %v1179_v4  ;;  %v1131_v3 = vld [vmem:[%s1339_s3] sm:$0xff]   ;;  %s967_s17 = sshll.u32 %s1183_s16, 4  ;;  %s968_s17 = int_to_ptr.vmem [resolvable:$true] %s967_s17 }
   0xe   :  { %p1160_p1 = scmp.lt.s32.totalorder %s968_s17, %s968_s17 }
  0xdd   :  { %v1231_v5 = vpop.f32.mrb[0].mxu1 }
  0xde   :  { %260 = vrot.lane.b32.xlu1 %v1231_v5, %s1181_s1  ;;  %v90_v6 = vpop.f32.mrb[1].mxu1 }
  0xdf   :  { %106 = vrot.lane.b32.xlu0 %v90_v6, %s1181_s1  ;;  %v1234_v7 = vpop.f32.mrb[2].mxu1 }
  0xe0   :  { %v1236_v8 = vpop.f32.mrb[3].mxu1 }
  0xe2   :  { %337 = vrot.lane.b32.xlu1 %v1234_v7, %s1181_s1 }
  0xe3   :  { %183 = vrot.lane.b32.xlu0 %v1236_v8, %s1181_s1 }
 0x150   :  { %v261_v9 = vpop.permute.xlu1 %260 }
 0x151   :  { %v107_v10 = vpop.permute.xlu0 %106 }
 0x152   :  { %1051 = vmatpush3.xpose.msk.msra.mxu1 %vm49_vm0, %v107_v10 }
 0x153   :  { %1055 = vmatprep.subr.mxu1 %v1179_v4 }
 0x154   :  { %v338_v11 = vpop.permute.xlu1 %337 }
 0x155   :  { %1053 = vmatmul.mubr.msk.f32.vlgmr.msra.gmra.mrb[4].mxu1 %vm49_vm0, %v90_v6  ;;  %1066 = vmatpush3.xpose.msk.msra.mxu0 %vm49_vm0, %v338_v11  ;;  %v184_v12 = vpop.permute.xlu0 %183 }
 0x156   :  { %1056 = vmatpush3.xpose.msk.msra.mxu1 %vm49_vm0, %v184_v12  ;;  %1057 = vmatprep.mubr.msk.f32.mxu1 %vm1180_vm1, %v1179_v4 }
 0x157   :  { %1060 = vmatprep.subr.mxu1 %v1179_v4  ;;  %1075 = vmatprep.subr.mxu0 %v1179_v4 }
 0x158   :  { %1068 = vmatmul.mubr.msk.f32.vlgmr.msra.gmra.mrb[0].mxu0 %vm49_vm0, %v1234_v7 }
 0x159   :  { %1058 = vmatmul.mubr.msk.f32.vlgmr.msra.gmra.mrb[6].mxu1 %vm49_vm0, %v1236_v8  ;;  %1077 = vmatprep.mubr.msk.f32.mxu0 %vm1180_vm1, %v1179_v4 }
 0x15a   :  { %1061 = vmatpush3.xpose.msk.msra.mxu1 %vm49_vm0, %v261_v9  ;;  %1062 = vmatprep.mubr.msk.f32.mxu1 %vm1180_vm1, %v1179_v4 }
 0x15b   :  { %1070 = vmatprep.subr.mxu1 %v1179_v4 }
 0x15d   :  { %1063 = vmatmul.mubr.msk.f32.vlgmr.msra.gmra.mrb[8].mxu1 %vm49_vm0, %v1231_v5 }
 0x15e   :  { %1072 = vmatprep.mubr.msk.f32.mxu1 %vm1180_vm1, %v1179_v4 }
 0x228   :  { %v178_v13 = vpop.f32.mrb[4].mxu1 }
 0x229   :  { %v413_v14 = vmul.f32 0.17677669, %v178_v13  ;;  %v1054_v15 = vpop.f32.mrb[5].mxu1 }
 0x22b   :  { %v409_v16 = vpop.f32.mrb[0].mxu0  ;;  %v418_v17 = vsel %vm417_vm2, %v413_v14, -inf }
 0x22c   :  { %v1069_v18 = vpop.f32.mrb[1].mxu0  ;;  %419 = vmax.xlane.f32.xlu0 %v418_v17  ;;  %v255_v19 = vpop.f32.mrb[6].mxu1  ;;  %v416_v26 = vmul.f32 0.17677669, %v409_v16 }
 0x22d   :  { %v414_v20 = vmul.f32 0.17677669, %v255_v19  ;;  %v1059_v21 = vpop.f32.mrb[7].mxu1  ;;  %v1137_v19 = vld [vmem:[%s1339_s3 + $0x30] sm:$0xff]  }
 0x22e   :  { %v427_v28 = vsel %vm417_vm2, %v416_v26, -inf }
 0x22f   :  { %v421_v22 = vsel %vm417_vm2, %v414_v20, -inf }
 0x230   :  { %422 = vmax.xlane.f32.xlu1 %v421_v22  ;;  %v332_v23 = vpop.f32.mrb[8].mxu1 }
 0x231   :  { %v415_v24 = vmul.f32 0.17677669, %v332_v23  ;;  %v1064_v25 = vpop.f32.mrb[9].mxu1 }
 0x233   :  { %v424_v27 = vsel %vm417_vm2, %v415_v24, -inf }
 0x234   :  { %425 = vmax.xlane.f32.xlu0 %v424_v27 }
 0x238   :  { %428 = vmax.xlane.f32.xlu0 %v427_v28 }
 0x241   :  { %462 = vrot.lane.b32.xlu1 %v90_v6, %s1182_s0  ;;  %v1134_v6 = vld [vmem:[%s1339_s3 + $0x18] sm:$0xff]  }
 0x2b9   :  { %v420_v29 = vpop.xlane.xlu0 %419 }
 0x2ba   :  { %v430_v30 = vsub.f32 %v413_v14, %v420_v29 }
 0x2bc   :  { %v434_v31 = vmul.f32 1.442695, %v430_v30 }
 0x2bd   :  { %v423_v32 = vpop.xlane.xlu1 %422 }
 0x2be   :  { %1139 = vpow2.f32 %v434_v31  ;;  %v431_v35 = vsub.f32 %v414_v20, %v423_v32  ;;  %v1138_v20 = vld [vmem:[%s1339_s3 + $0x38] sm:$0xff]  }
 0x2c0   :  { %v436_v39 = vmul.f32 1.442695, %v431_v35 }
 0x2c1   :  { %v463_v33 = vpop.permute.xlu1 %462  ;;  %v426_v34 = vpop.xlane.xlu0 %425 }
 0x2c2   :  { %1071 = vmatpush3.msra.mxu1 %v463_v33  ;;  %v432_v46 = vsub.f32 %v415_v24, %v426_v34 }
 0x2c3   :  { %1080 = vmatprep.subr.mxu1 %v1179_v4 }
 0x2c4   :  { %v438_v47 = vmul.f32 1.442695, %v432_v46 }
 0x2c5   :  { %v429_v36 = vpop.xlane.xlu0 %428 }
 0x2c6   :  { %v433_v37 = vsub.f32 %v416_v26, %v429_v36 }
 0x2c8   :  { %v1140_v38 = vpop.eup %1139  ;;  %v440_v40 = vmul.f32 1.442695, %v433_v37 }
 0x2c9   :  { %v442_v41 = vsel %vm417_vm2, %v1140_v38, 0.0 }
 0x2ca   :  { %1141 = vpow2.f32 %v440_v40  ;;  %443 = vadd.xlane.f32.xlu1 %v442_v41 }
 0x2cb   :  { %1143 = vpow2.f32 %v436_v39 }
 0x2cc   :  { %1145 = vpow2.f32 %v438_v47 }
 0x2d4   :  { %v1142_v42 = vpop.eup %1141 }
 0x2d5   :  { %v451_v43 = vsel %vm417_vm2, %v1142_v42, 0.0  ;;  %v1144_v44 = vpop.eup %1143 }
 0x2d6   :  { %452 = vadd.xlane.f32.xlu0 %v451_v43  ;;  %v445_v45 = vsel %vm417_vm2, %v1144_v44, 0.0  ;;  %v1146_v48 = vpop.eup %1145 }
 0x2d7   :  { %v448_v49 = vsel %vm417_vm2, %v1146_v48, 0.0 }
 0x2da   :  { %446 = vadd.xlane.f32.xlu0 %v445_v45 }
 0x2db   :  { %614 = vrot.lane.b32.xlu1 %v1231_v5, %s1182_s0  ;;  %v1133_v5 = vld [vmem:[%s1339_s3 + $0x10] sm:$0xff]  }
 0x2f0   :  { %538 = vrot.lane.b32.xlu0 %v1236_v8, %s1182_s0  ;;  %v1136_v8 = vld [vmem:[%s1339_s3 + $0x28] sm:$0xff]  }
 0x2ff   :  { %449 = vadd.xlane.f32.xlu1 %v448_v49 }
 0x310   :  { %690 = vrot.lane.b32.xlu1 %v1234_v7, %s1182_s0  ;;  %v1135_v7 = vld [vmem:[%s1339_s3 + $0x20] sm:$0xff]  }
 0x357   :  { %v444_v50 = vpop.xlane.xlu1 %443 }
 0x358   :  { %1147 = vrcp.f32 %v444_v50 }
 0x35b   :  { %v615_v54 = vpop.permute.xlu1 %614 }
 0x362   :  { %v1148_v51 = vpop.eup %1147 }
 0x363   :  { %v458_v52 = vmul.f32 %v1148_v51, %v1140_v38  ;;  %v453_v53 = vpop.xlane.xlu0 %452 }
 0x365   :  { %1073 = vmatmul.mubr.msk.f32.vlgmr.msra.gmra.mrb[10].mxu1 %vm417_vm2, %v458_v52 }
 0x366   :  { %1081 = vmatpush3.msra.mxu1 %v615_v54  ;;  %1082 = vmatprep.mubr.msk.f32.mxu1 %vm1180_vm1, %v1179_v4 }
 0x367   :  { %v447_v55 = vpop.xlane.xlu0 %446  ;;  %1090 = vmatprep.subr.bf16.mxu1 %v1129_v1 }
 0x368   :  { %1149 = vrcp.f32 %v447_v55 }
 0x369   :  { %1151 = vrcp.f32 %v453_v53 }
 0x36b   :  { %v539_v56 = vpop.permute.xlu0 %538 }
 0x36c   :  { %1076 = vmatpush3.msra.mxu0 %v539_v56 }
 0x36d   :  { %1085 = vmatprep.subr.mxu0 %v1179_v4 }
 0x372   :  { %v1150_v57 = vpop.eup %1149 }
 0x373   :  { %v459_v58 = vmul.f32 %v1150_v57, %v1144_v44  ;;  %v1152_v60 = vpop.eup %1151 }
 0x374   :  { %v461_v61 = vmul.f32 %v1152_v60, %v1142_v42 }
 0x375   :  { %1078 = vmatmul.mubr.msk.f32.vlgmr.msra.gmra.mrb[2].mxu0 %vm417_vm2, %v459_v58 }
 0x376   :  { %1087 = vmatprep.mubr.msk.f32.mxu0 %vm1180_vm1, %v1179_v4  ;;  %v1132_v4 = vld [vmem:[%s1339_s3 + $0x8] sm:$0xff]   ;;  %s1155_s3 = scalar_lea.vmem %s968_s17, 512 }
 0x377   :  { %p1156_p0 = scmp.ne.s32.totalorder %s968_s17, %s1155_s3  ;;  %p1161_p2 = scmp.lt.s32.totalorder %s1155_s3, %s1155_s3 }
 0x379   :  { %p1162_p3 = por %p1161_p2, %p1160_p1 }
 0x37b   :  { %p1163_p4 = pnand %p1162_p3, %p1156_p0 }
 0x38c   :  { %v450_v59 = vpop.xlane.xlu1 %449 }
 0x38d   :  { %1153 = vrcp.f32 %v450_v59 }
 0x390   :  { %v691_v62 = vpop.permute.xlu1 %690 }
 0x391   :  { %1086 = vmatpush3.msra.mxu0 %v691_v62 }
 0x392   :  { %1088 = vmatmul.mubr.msk.f32.vlgmr.msra.gmra.mrb[4].mxu0 %vm417_vm2, %v461_v61  ;;  %1098 = vmatprep.subr.bf16.mxu0 %v1131_v3 }
 0x393   :  { %1099 = vmatpush3.bf16.msra.mxu0 %v1131_v3 }
 0x394   :  { %1100 = vmatprep.subr.bf16.mxu0 %v1132_v4 }
 0x397   :  { %v1154_v63 = vpop.eup %1153  ;;  %1101 = vmatpush3.bf16.msra.mxu0 %v1132_v4 }
 0x398   :  { %v460_v0 = vmul.f32 %v1154_v63, %v1146_v48  ;;  %1102 = vmatprep.subr.bf16.mxu0 %v1133_v5 }
 0x39a   :  { %1083 = vmatmul.mubr.msk.f32.vlgmr.msra.gmra.mrb[12].mxu1 %vm417_vm2, %v460_v0 }
 0x39b   :  { %1091 = vmatpush3.bf16.msra.mxu1 %v1129_v1  ;;  %1103 = vmatpush3.bf16.msra.mxu0 %v1133_v5 }
 0x39c   :  { %1092 = vmatprep.subr.bf16.mxu1 %v1130_v2  ;;  %1104 = vmatprep.subr.bf16.mxu0 %v1134_v6 }
 0x39f   :  { %1093 = vmatpush3.bf16.msra.mxu1 %v1130_v2  ;;  %1105 = vmatpush3.bf16.msra.mxu0 %v1134_v6 }
 0x3a0   :  { %1106 = vmatprep.subr.bf16.mxu0 %v1135_v7 }
 0x3a3   :  { %1107 = vmatpush3.bf16.msra.mxu0 %v1135_v7 }
 0x3a4   :  { %1108 = vmatprep.subr.bf16.mxu0 %v1136_v8 }
 0x3a7   :  { %1109 = vmatpush3.bf16.msra.mxu0 %v1136_v8 }
 0x3a8   :  { %1110 = vmatprep.subr.bf16.mxu0 %v1137_v19 }
 0x3ab   :  { %1111 = vmatpush3.bf16.msra.mxu0 %v1137_v19 }
 0x3ac   :  { %1112 = vmatprep.subr.bf16.mxu0 %v1138_v20 }
 0x3af   :  { %1113 = vmatpush3.bf16.msra.mxu0 %v1138_v20 }
 0x438   :  { %v534_v9 = vpop.f32.mrb[10].mxu1 }
 0x439   :  { %v1074_v10 = vpop.f32.mrb[11].mxu1 }
 0x448   :  { %v610_v11 = vpop.f32.mrb[2].mxu0 }
 0x449   :  { %v766_v12 = vpack.c.bf16 %v610_v11, %v534_v9  ;;  %v1079_v13 = vpop.f32.mrb[3].mxu0 }
 0x44b   :  { %1094 = vmatprep.mubr.msk.bf16.mxu1 %vm49_vm0, %v766_v12 }
 0x465   :  { %v762_v14 = vpop.f32.mrb[4].mxu0 }
 0x466   :  { %v1089_v15 = vpop.f32.mrb[5].mxu0 }
 0x46d   :  { %v686_v16 = vpop.f32.mrb[12].mxu1 }
 0x46e   :  { %v767_v17 = vpack.c.bf16 %v762_v14, %v686_v16  ;;  %v1084_v18 = vpop.f32.mrb[13].mxu1 }
 0x470   :  { %1095 = vmatmul.mubr.msk.bf16.vlgmr.msra.gmra.mrb[16].mxu1 %vm49_vm0, %v767_v17 }
 0x543   :  { %v1096_v21 = vpop.f32.mrb[16].mxu1 }
 0x544   :  { %v824_v22 = vpop.f32.mrb[17].mxu1  ;;  %v841_v24 = vmax.f32 %v1096_v21, 0.0 }
 0x545   :  { %v1097_v23 = vpop.f32.mrb[18].mxu1  ;;  %v839_v27 = vmax.f32 %v824_v22, 0.0 }
 0x546   :  { %v842_v25 = vmax.f32 %v1097_v23, 0.0  ;;  %v827_v26 = vpop.f32.mrb[19].mxu1 }
 0x547   :  { %v840_v28 = vmax.f32 %v827_v26, 0.0 }
 0x548   :  { %v844_v29 = vpack.c.bf16 %v842_v25, %v841_v24 }
 0x549   :  { %v843_v30 = vpack.c.bf16 %v840_v28, %v839_v27 }
 0x54b   :  { %1114 = vmatprep.mubr.bf16.mxu0 %v843_v30 }
 0x54c   :  { %1115 = vmatmul.mubr.bf16.vlgmr.msra.gmra.mrb[8].mxu0 %v844_v29 }
 0x61f   :  { %v1116_v31 = vpop.f32.mrb[8].mxu0 }
 0x620   :  { %960 = vst.msk [vmem:[#allocation2 + $0x10] sm:$0xff] %vm49_vm0, %v1116_v31  ;;  %v943_v32 = vpop.f32.mrb[9].mxu0 }
 0x621   :  { %958 = vst.msk [vmem:[#allocation2] sm:$0xff] %vm49_vm0, %v943_v32  ;;  %v1117_v33 = vpop.f32.mrb[10].mxu0 }
 0x622   :  { %961 = vst.msk [vmem:[#allocation2 + $0x18] sm:$0xff] %vm49_vm0, %v1117_v33  ;;  %v946_v34 = vpop.f32.mrb[11].mxu0 }
 0x623   :  { %959 = vst.msk [vmem:[#allocation2 + $0x8] sm:$0xff] %vm49_vm0, %v946_v34 }
 0x624   :  { %1166 = shalt.err (!%p1163_p4)
}
 0x625   :  { %s1167_s20 = scalar_lea.hbm %s1340_s4, 512 }
 0x626   :  { %p1168_p5 = scmp.ne.s32.totalorder %s1340_s4, %s1167_s20  ;;  %p1171_p6 = scmp.lt.u32.totalorder %s1167_s20, %s1340_s4 }
 0x628   :  { %p1173_p7 = pnand %p1171_p6, %p1168_p5 }
 0x62a   :  { %1176 = shalt.err (!%p1173_p7)
}
 0x62b   :  { %s1184_s23 = smov 128   ;;  %s1185_s24 = smov 8  }
 0x62c   :  { %973 = dma.vmem_to_hbm [thread:$0]  %s968_s17, 512, %s1340_s4, [#allocation3], %s1184_s23, %s1184_s23, %s1185_s24  }
 0x62d   :  { %1177 = dma.done.wait [#allocation3], 512  }
 0x62e   :  { %1178 = vsyncadd [#allocation3], 4294966784 }
 0x62f   :  { %977 = vsyncpa [#allocation3], 1 }

</bundles_post_ra>
